<compile_context>
chip_gen: v6e
topology: v6e:2x2x1
jax: 0.10.0
libtpu: 0.0.40
codegen_flags: <defaults>
</compile_context>

<pallas_src>
import jax
import jax.numpy as jnp
from jax.experimental import pallas as pl
from jax.experimental.pallas import tpu as pltpu


def _identity_kernel(x_ref, o_ref):
    # Straight VMEM tile copy: load the whole current block, store it out.
    o_ref[...] = x_ref[...]


def _sublane_min(dtype):
    itemsize = jnp.dtype(dtype).itemsize
    if itemsize >= 4:
        return 8      # f32 / i32
    if itemsize == 2:
        return 16     # bf16 / f16
    return 32         # int8 / fp8


_LANE = 128
_MAX_LANE_WIDTH = 2048                   # cap C so rows stay plentiful
_TARGET_BLOCK_BYTES = 2 * 1024 * 1024    # ~2 MiB blocks -> ~8 MiB VMEM with
                                         # in+out double-buffering (fits the
                                         # 16 MiB scoped default on v5e and
                                         # v7x's 64 MiB physical VMEM).


def _pallas_identity(x):
    """Identity pass implemented as a lane-dense streaming copy kernel."""
    n = x.size
    if n == 0 or (n % _LANE) != 0:
        # Identity needs no compute; if the flat size cannot form a
        # lane-dense (rows, k*128) slab without padding, the zero-copy path
        # is strictly better (no extra HBM traffic, no kernel launch).
        return x

    dtype = x.dtype
    itemsize = jnp.dtype(dtype).itemsize
    sub_min = _sublane_min(dtype)

    # Lane-dense width: largest power-of-two multiple of 128 dividing the
    # flat size (capped), while keeping enough rows for sublane tiling.
    c = _LANE
    while (c * 2 <= _MAX_LANE_WIDTH
           and n % (c * 2) == 0
           and n // (c * 2) >= sub_min):
        c *= 2
    r = n // c

    # Pure reshape of a contiguous array: metadata only, no data movement.
    x2d = x.reshape(r, c)

    if r <= sub_min:
        # Tiny tensor: one block covering the whole array (block shape equal
        # to the full array dims is exempt from the (sublane,128) rule).
        tile_rows = r
    else:
        # MB-scale blocks, dtype-aware sublane multiple.  Ragged last block
        # (if tile_rows does not divide r) is masked by Pallas -- no jnp.pad
        # or post-slice passes over the tensor.
        tile_rows = max(sub_min, _TARGET_BLOCK_BYTES // (c * itemsize))
        tile_rows = (tile_rows // sub_min) * sub_min
        tile_rows = min(tile_rows, r)

    grid = (pl.cdiv(r, tile_rows),)

    y2d = pl.pallas_call(
        _identity_kernel,
        out_shape=jax.ShapeDtypeStruct((r, c), dtype),
        grid_spec=pltpu.PrefetchScalarGridSpec(
            num_scalar_prefetch=0,
            grid=grid,
            in_specs=[pl.BlockSpec((tile_rows, c), lambda i: (i, 0))],
            out_specs=pl.BlockSpec((tile_rows, c), lambda i: (i, 0)),
        ),
        compiler_params=pltpu.CompilerParams(
            # Single parallel axis: shards across the 2 TensorCores on v7x,
            # no-op on v5e/v6e.
            dimension_semantics=("parallel",),
        ),
    )(x2d)

    return y2d.reshape(x.shape)


class PrintPallas:
    """JAX/Pallas equivalent of the PyTorch `Print` nn.Module."""

    def __init__(self, name, copy_through_kernel=True):
        self._name = name
        # copy_through_kernel=False gives the zero-cost identity (return x),
        # which is the preferred production path per the perf review; True
        # keeps the (optimized) Pallas copy on the hot path so the kernel is
        # actually exercised / profileable.
        self._copy_through_kernel = copy_through_kernel

    def __call__(self, x):
        # Host-side print of the (static) shape, matching PyTorch eager.
        # Note: under jax.jit this fires at trace time, not per execution.
        print(f"{self._name}: {tuple(x.shape)}")
        if not self._copy_through_kernel:
            return x
        return _pallas_identity(x)


if __name__ == "__main__":
    key = jax.random.PRNGKey(0)
    # Small NCHW-ish tensor consistent with how Print is used inside Enformer
    # pipelines (it just passes activations through).
    x = jax.random.normal(key, (2, 4, 16, 16), dtype=jnp.float32)

    mod = PrintPallas("print_layer")
    y = mod(x)
    y = jax.block_until_ready(y)

    assert y.shape == x.shape
    assert y.dtype == x.dtype
    assert bool(jnp.all(y == x))
    print("KERNEL_OK")
</pallas_src>

<mosaic_0001>
module attributes {stable_mosaic.version = 11 : i64} {
  func.func @_identity_kernel(%arg0: i32, %arg1: memref<8x256xf32, #tpu.memory_space<vmem>>, %arg2: memref<8x256xf32, #tpu.memory_space<vmem>>) attributes {dimension_semantics = [#tpu.dimension_semantics<parallel>], iteration_bounds = array<i64: 1>, scalar_prefetch = 0 : i64, scratch_operands = 0 : i64, tpu.core_type = #tpu.core_type<tc>, window_params = [{transform_indices = @transform_0, window_bounds = array<i64: 8, 256>}, {transform_indices = @transform_1, window_bounds = array<i64: 8, 256>}]} {
    %c0 = arith.constant 0 : index
    %c0_0 = arith.constant 0 : index
    %0 = vector.load %arg1[%c0, %c0_0] : memref<8x256xf32, #tpu.memory_space<vmem>>, vector<8x256xf32>
    %c0_1 = arith.constant 0 : index
    %c0_2 = arith.constant 0 : index
    %1 = vector.load %arg2[%c0_1, %c0_2] : memref<8x256xf32, #tpu.memory_space<vmem>>, vector<8x256xf32>
    tpu.vector_store %arg2[%c0_1, %c0_2], %0 {strides = array<i32>} : memref<8x256xf32, #tpu.memory_space<vmem>>, vector<8x256xf32>,
    return
  }
  func.func @transform_0(%arg0: i32) -> (i32, i32) {
    %c0_i32 = arith.constant 0 : i32
    %c0_i32_0 = arith.constant 0 : i32
    return %arg0, %c0_i32 : i32, i32
  }
  func.func @transform_1(%arg0: i32) -> (i32, i32) {
    %c0_i32 = arith.constant 0 : i32
    %c0_i32_0 = arith.constant 0 : i32
    return %arg0, %c0_i32 : i32, i32
  }
}

</mosaic_0001>

<bundles_post_ra>
// kernel: tpu_custom_call.1
= control target key start
LH: loop header
LB: loop body
LE: loop exit
PB: predicated region body
PF: predicated region fallthrough
CT: control target
= control target key end

     0   :  { %6 = vsyncpa [#allocation3], 0  ;;  %s104_s0 = inlined_call_operand.hbm [shape: f32[8,256], index: 0, kind: input, shape index: {}]   ;;  %s105_s1 = inlined_call_operand.hbm [shape: f32[8,256], index: 1, kind: output, shape index: {}]  }
   0x1   :  { %7 = vsyncpa [#allocation4], 0  ;;  %s86_s6 = smov [#allocation2]  }
   0x2   :  { %s14_s7 = sshll.u32 %s86_s6, 4  ;;  %s15_s7 = int_to_ptr.vmem [resolvable:$true] %s14_s7 }
   0x3   :  { %s50_s8 = scalar_lea.vmem %s15_s7, 256  ;;  %p55_p1 = scmp.lt.s32.totalorder %s15_s7, %s15_s7 }
   0x4   :  { %p51_p0 = scmp.ne.s32.totalorder %s15_s7, %s50_s8  ;;  %p56_p2 = scmp.lt.s32.totalorder %s50_s8, %s50_s8 }
   0x6   :  { %p57_p3 = por %p56_p2, %p55_p1 }
   0x8   :  { %p58_p4 = pnand %p57_p3, %p51_p0 }
   0xa   :  { %61 = shalt.err (!%p58_p4)
}
   0xb   :  { %17 = dma.hbm_to_vmem [thread:$0]  %s104_s0, 256, %s15_s7, [#allocation3]  }
   0xc   :  { %82 = dma.done.wait [#allocation3], 256  }
   0xd   :  { %83 = vsyncadd [#allocation3], 4294967040  ;;  %s87_s11 = smov [#allocation5]   ;;  %v21_v0 = vld [vmem:[#allocation2] sm:$0xff]  ;;  %v22_v1 = vld [vmem:[#allocation2 + $0x8] sm:$0xff] }
   0xe   :  { %s31_s12 = sshll.u32 %s87_s11, 4  ;;  %23 = vst [vmem:[#allocation5] sm:$0xff] %v21_v0  ;;  %24 = vst [vmem:[#allocation5 + $0x8] sm:$0xff] %v22_v1  ;;  %s32_s12 = int_to_ptr.vmem [resolvable:$true] %s31_s12 }
   0xf   :  { %s62_s13 = scalar_lea.vmem %s32_s12, 256  ;;  %p67_p6 = scmp.lt.s32.totalorder %s32_s12, %s32_s12 }
  0x10   :  { %p63_p5 = scmp.ne.s32.totalorder %s32_s12, %s62_s13  ;;  %p68_p7 = scmp.lt.s32.totalorder %s62_s13, %s62_s13 }
  0x12   :  { %p69_p8 = por %p68_p7, %p67_p6 }
  0x14   :  { %p70_p9 = pnand %p69_p8, %p63_p5 }
  0x16   :  { %73 = shalt.err (!%p70_p9)
}
  0x17   :  { %34 = dma.vmem_to_hbm [thread:$0]  %s32_s12, 256, %s105_s1, [#allocation4]  }
  0x18   :  { %84 = dma.done.wait [#allocation4], 256  }
  0x19   :  { %85 = vsyncadd [#allocation4], 4294967040 }
  0x1a   :  { %38 = vsyncpa [#allocation3], 1 }
  0x1b   :  { %39 = vsyncpa [#allocation4], 1 }

</bundles_post_ra>
